<compile_context>
chip_gen: v5e
topology: v5e:2x2
jax: 0.10.0
libtpu: 0.0.40
codegen_flags: <defaults>
</compile_context>

<pallas_src>
import functools

import jax
import jax.numpy as jnp
from jax.experimental import pallas as pl
from jax.experimental.pallas import tpu as pltpu


def _mul_kernel(x_ref, o_ref, *, scale):
    # Pure VPU elementwise hot path: whole VMEM tile * scalar constant.
    o_ref[...] = x_ref[...] * jnp.asarray(scale, dtype=o_ref.dtype)


def mul_pallas(x, scale, *, target_block_bytes=2 * 1024 * 1024, max_lanes=4096):
    """Multiply `x` by the (construction-time) scalar `scale` on TPU via Pallas."""
    orig_shape = x.shape

    # Match PyTorch promotion semantics (e.g. int32 * 0.5 -> float32).
    out_dtype = jnp.result_type(x, scale)
    if x.dtype != out_dtype:
        x = x.astype(out_dtype)

    n = x.size
    itemsize = jnp.dtype(out_dtype).itemsize

    # Pick the widest lane-dense column count: the largest multiple of 128 that
    # divides the flattened size, capped at `max_lanes`.
    lanes = 0
    c = max(128, min(max_lanes, n) // 128 * 128)
    while c >= 128:
        if n % c == 0:
            lanes = c
            break
        c -= 128

    if n == 0 or lanes == 0:
        # Total size not a multiple of 128 (or empty): a padded-copy round trip
        # would double HBM traffic for a bandwidth-bound op, so let XLA fuse it.
        return x * jnp.asarray(scale, dtype=out_dtype)

    rows = n // lanes
    x2d = x.reshape(rows, lanes)  # contiguous reshape: metadata only, no HBM traffic

    # Sublane packing granularity: 8 for 4-byte, 16 for 2-byte, 32 for 1-byte dtypes.
    sub = max(8, 32 // itemsize)

    if rows <= sub:
        tr = rows  # single full-extent block along rows (always a legal block dim)
    else:
        tr_target = max(sub, target_block_bytes // (lanes * itemsize))
        tr = min(rows, tr_target)
        tr = max(sub, (tr // sub) * sub)  # round down to the packing granularity

    grid = (pl.cdiv(rows, tr),)

    out2d = pl.pallas_call(
        functools.partial(_mul_kernel, scale=scale),
        out_shape=jax.ShapeDtypeStruct((rows, lanes), out_dtype),
        grid_spec=pltpu.PrefetchScalarGridSpec(
            num_scalar_prefetch=0,
            grid=grid,
            in_specs=[pl.BlockSpec((tr, lanes), lambda i: (i, 0))],
            out_specs=pl.BlockSpec((tr, lanes), lambda i: (i, 0)),
        ),
        compiler_params=pltpu.CompilerParams(
            dimension_semantics=("parallel",),
        ),
        cost_estimate=pl.CostEstimate(
            flops=n,
            transcendentals=0,
            bytes_accessed=2 * n * itemsize,
        ),
    )(x2d)

    return out2d.reshape(orig_shape)


if __name__ == "__main__":
    key = jax.random.PRNGKey(0)
    scale = 0.5  # constructor argument of Mul(scale=0.5)

    # Small NCHW activation consistent with the module's forward.
    x = jax.random.normal(key, (2, 4, 16, 16), dtype=jnp.float32)
    out = jax.block_until_ready(mul_pallas(x, scale))
    ref = x * scale
    assert out.shape == ref.shape and out.dtype == ref.dtype
    assert jnp.allclose(out, ref, atol=1e-6, rtol=1e-6)

    # Secondary sanity check: a shape that exercises rows > 1 and wide lanes.
    x2 = jax.random.normal(jax.random.PRNGKey(1), (4, 8, 64, 128), dtype=jnp.float32)
    out2 = jax.block_until_ready(mul_pallas(x2, scale))
    assert jnp.allclose(out2, x2 * scale, atol=1e-6, rtol=1e-6)

    print("KERNEL_OK")
</pallas_src>

<mosaic_0001>
module attributes {stable_mosaic.version = 11 : i64} {
  func.func @_mul_kernel(%arg0: i32, %arg1: memref<1x2048xf32, #tpu.memory_space<vmem>>, %arg2: memref<1x2048xf32, #tpu.memory_space<vmem>>) attributes {dimension_semantics = [#tpu.dimension_semantics<parallel>], iteration_bounds = array<i64: 1>, scalar_prefetch = 0 : i64, scratch_operands = 0 : i64, tpu.core_type = #tpu.core_type<tc>, window_params = [{transform_indices = @transform_0, window_bounds = array<i64: 1, 2048>}, {transform_indices = @transform_1, window_bounds = array<i64: 1, 2048>}]} {
    %c0 = arith.constant 0 : index
    %c0_0 = arith.constant 0 : index
    %0 = vector.load %arg1[%c0, %c0_0] : memref<1x2048xf32, #tpu.memory_space<vmem>>, vector<1x2048xf32>
    %cst = arith.constant 5.000000e-01 : f32
    %1 = vector.broadcast %cst : f32 to vector<1x2048xf32>
    %2 = arith.mulf %0, %1 : vector<1x2048xf32>
    %c0_1 = arith.constant 0 : index
    %c0_2 = arith.constant 0 : index
    %3 = vector.load %arg2[%c0_1, %c0_2] : memref<1x2048xf32, #tpu.memory_space<vmem>>, vector<1x2048xf32>
    tpu.vector_store %arg2[%c0_1, %c0_2], %2 {strides = array<i32>} : memref<1x2048xf32, #tpu.memory_space<vmem>>, vector<1x2048xf32>,
    return
  }
  func.func @transform_0(%arg0: i32) -> (i32, i32) {
    %c0_i32 = arith.constant 0 : i32
    %c0_i32_0 = arith.constant 0 : i32
    return %arg0, %c0_i32 : i32, i32
  }
  func.func @transform_1(%arg0: i32) -> (i32, i32) {
    %c0_i32 = arith.constant 0 : i32
    %c0_i32_0 = arith.constant 0 : i32
    return %arg0, %c0_i32 : i32, i32
  }
}

</mosaic_0001>

<bundles_post_ra>
// kernel: tpu_custom_call.1
= control target key start
LH: loop header
LB: loop body
LE: loop exit
PB: predicated region body
PF: predicated region fallthrough
CT: control target
= control target key end

     0   :  { %6 = vsyncpa [#allocation3], 0  ;;  %s118_s0 = inlined_call_operand.hbm [shape: f32[1,2048], index: 0, kind: input, shape index: {}]   ;;  %s119_s1 = inlined_call_operand.hbm [shape: f32[1,2048], index: 1, kind: output, shape index: {}]  }
   0x1   :  { %7 = vsyncpa [#allocation4], 0  ;;  %s13_s8 = sshll.u32 %s118_s0, 4  ;;  %s100_s9 = smov [#allocation2]   ;;  %s14_s8 = int_to_ptr.hbm [resolvable:$true] %s13_s8 }
   0x2   :  { %s15_s10 = sshll.u32 %s100_s9, 4  ;;  %s16_s10 = int_to_ptr.vmem [resolvable:$true] %s15_s10 }
   0x3   :  { %18 = dma.hbm_to_vmem [thread:$0]  %s14_s8, 256, %s16_s10, [#allocation3]  }
   0x4   :  { %96 = dma.done.wait [#allocation3], 256  }
   0x5   :  { %97 = vsyncadd [#allocation3], 4294967040  ;;  %s101_s11 = smov [#allocation5]   ;;  %s36_s15 = sshll.u32 %s119_s1, 4  ;;  %v23_v0 = vld [vmem:[#allocation2] sm:$0xff]  ;;  %v24_v1 = vld [vmem:[#allocation2 + $0x8] sm:$0xff]  ;;  %s37_s15 = int_to_ptr.hbm [resolvable:$true] %s36_s15 }
   0x6   :  { %s34_s12 = sshll.u32 %s101_s11, 4  ;;  %v25_v2 = vmul.f32 0.5, %v23_v0  ;;  %v26_v3 = vmul.f32 0.5, %v24_v1  ;;  %s35_s12 = int_to_ptr.vmem [resolvable:$true] %s34_s12 }
   0x8   :  { %27 = vst [vmem:[#allocation5] sm:$0xff] %v25_v2 }
   0x9   :  { %28 = vst [vmem:[#allocation5 + $0x8] sm:$0xff] %v26_v3 }
   0xa   :  { %39 = dma.vmem_to_hbm [thread:$0]  %s35_s12, 256, %s37_s15, [#allocation4]  }
   0xb   :  { %98 = dma.done.wait [#allocation4], 256  }
   0xc   :  { %99 = vsyncadd [#allocation4], 4294967040 }
   0xd   :  { %44 = vsyncpa [#allocation3], 1 }
   0xe   :  { %45 = vsyncpa [#allocation4], 1 }

</bundles_post_ra>
